<compile_context>
chip_gen: v5e
topology: v5e:2x2
jax: 0.10.0
libtpu: 0.0.40
codegen_flags: <defaults>
</compile_context>

<pallas_src>
import functools
import math

import jax
import jax.numpy as jnp
from jax.experimental import pallas as pl
from jax.experimental.pallas import tpu as pltpu


# ----------------------------- Pallas kernels ------------------------------

def _matmul_bias_kernel(x_ref, w_ref, b_ref, o_ref, acc_ref, *, relu):
    """acc += x @ w (bf16 operands, f32 accumulate); on last K step: o = [relu](acc + bias)."""
    @pl.when(pl.program_id(1) == 0)
    def _():
        acc_ref[...] = jnp.zeros_like(acc_ref)

    acc_ref[...] += jnp.dot(x_ref[...], w_ref[...],
                            preferred_element_type=jnp.float32)

    @pl.when(pl.program_id(1) == pl.num_programs(1) - 1)
    def _():
        out = acc_ref[...] + b_ref[...]
        if relu:
            out = jnp.maximum(out, 0.0)
        o_ref[...] = out.astype(o_ref.dtype)


def _add_relu_kernel(a_ref, b_ref, o_ref):
    s = a_ref[...].astype(jnp.float32) + b_ref[...].astype(jnp.float32)
    o_ref[...] = jnp.maximum(s, 0.0).astype(o_ref.dtype)


def _window_max_kernel(p_ref, o_ref):
    o_ref[...] = jnp.max(p_ref[...], axis=1).astype(o_ref.dtype)


def _global_avg_kernel(x_ref, o_ref):
    o_ref[...] = jnp.mean(x_ref[...].astype(jnp.float32), axis=1)


# ------------------------------ kernel wrappers ------------------------------

def _pick_tk(K):
    """K-tile size: full K when small, else a lane-aligned divisor of K."""
    if K <= 2048:
        return K
    for tk in (1024, 512, 256, 128):
        if K % tk == 0:
            return tk
    return K


def matmul_affine(x, w, bias, relu, out_dtype=jnp.bfloat16):
    """x:(M,K) @ w:(K,N) + bias(N), optional ReLU. bf16 MXU operands, f32 accumulate."""
    M, K = x.shape
    K2, N = w.shape
    assert K == K2

    # Lane-dense output: pad N up to a multiple of 128 (only triggers for the embed head
    # in this model; conv Cout values are padded to 128 at parameter-build time).
    Np = ((N + 127) // 128) * 128
    if Np != N:
        w = jnp.pad(w, ((0, 0), (0, Np - N)))
        bias = jnp.pad(bias, ((0, Np - N),))
    bias2 = bias.reshape(1, Np).astype(jnp.float32)

    x = x.astype(jnp.bfloat16)
    w = w.astype(jnp.bfloat16)

    tm = 512 if M > 512 else M
    gm = pl.cdiv(M, tm)
    tk = _pick_tk(K)
    gk = K // tk

    kernel = functools.partial(_matmul_bias_kernel, relu=relu)
    out = pl.pallas_call(
        kernel,
        out_shape=jax.ShapeDtypeStruct((M, Np), out_dtype),
        grid=(gm, gk),
        in_specs=[
            pl.BlockSpec((tm, tk), lambda i, k: (i, k)),
            pl.BlockSpec((tk, Np), lambda i, k: (k, 0)),
            pl.BlockSpec((1, Np), lambda i, k: (0, 0)),
        ],
        out_specs=pl.BlockSpec((tm, Np), lambda i, k: (i, 0)),
        scratch_shapes=[pltpu.VMEM((tm, Np), jnp.float32)],
        compiler_params=pltpu.CompilerParams(
            dimension_semantics=("parallel", "arbitrary"),
            vmem_limit_bytes=48 * 1024 * 1024,   # safe on v7x (64 MiB physical VMEM)
        ),
    )(x, w, bias2)

    if Np != N:
        out = out[:, :N]
    return out


def add_relu(a, b):
    """Elementwise relu(a + b) on 2-D (M, C) activations, row-tiled."""
    assert a.shape == b.shape and a.ndim == 2
    M, C = a.shape
    tm = 512 if M > 512 else M
    gm = pl.cdiv(M, tm)
    spec = pl.BlockSpec((tm, C), lambda i: (i, 0))
    return pl.pallas_call(
        _add_relu_kernel,
        out_shape=jax.ShapeDtypeStruct((M, C), a.dtype),
        grid=(gm,),
        in_specs=[spec, spec],
        out_specs=pl.BlockSpec((tm, C), lambda i: (i, 0)),
        compiler_params=pltpu.CompilerParams(dimension_semantics=("parallel",)),
    )(a, b)


# ------------------------------ JAX glue ------------------------------------

def _im2col(x, kh, kw, stride, pad, pad_value=0.0):
    """x: (B,H,W,C) NHWC -> patches (B,Ho,Wo,kh*kw,C) (same dtype as x, i.e. bf16)."""
    B, H, W, C = x.shape
    if pad > 0:
        x = jnp.pad(x, ((0, 0), (pad, pad), (pad, pad), (0, 0)),
                    constant_values=pad_value)
    Hp, Wp = H + 2 * pad, W + 2 * pad
    Ho = (Hp - kh) // stride + 1
    Wo = (Wp - kw) // stride + 1
    cols = []
    for i in range(kh):
        for j in range(kw):
            cols.append(x[:, i:i + stride * Ho:stride, j:j + stride * Wo:stride, :])
    patches = jnp.stack(cols, axis=3)  # (B, Ho, Wo, kh*kw, C)
    return patches, (B, Ho, Wo)


def conv_bn(x, w_hwio, bias, stride, pad, relu):
    """Conv2d (no bias) + folded eval-mode BatchNorm bias (+ optional ReLU). x is bf16 NHWC."""
    kh, kw, cin, cout = w_hwio.shape
    assert x.shape[-1] == cin
    if kh == 1 and kw == 1 and pad == 0:
        # 1x1 conv: no patch materialization at all.
        if stride > 1:
            x = x[:, ::stride, ::stride, :]
        B, Ho, Wo, _ = x.shape
        xm = x.reshape(B * Ho * Wo, cin)
    else:
        patches, (B, Ho, Wo) = _im2col(x, kh, kw, stride, pad)
        xm = patches.reshape(B * Ho * Wo, kh * kw * cin)
    wm = w_hwio.reshape(kh * kw * cin, cout)
    out = matmul_affine(xm, wm, bias, relu, out_dtype=jnp.bfloat16)
    return out.reshape(B, Ho, Wo, cout)


def max_pool_3x3_s2(x):
    """MaxPool2d(kernel_size=3, stride=2, padding=1) on NHWC (bf16)."""
    patches, (B, Ho, Wo) = _im2col(x, 3, 3, 2, 1, pad_value=-jnp.inf)
    C = x.shape[-1]
    M = B * Ho * Wo
    pm = patches.reshape(M, 9, C)
    tm = 512 if M > 512 else M
    gm = pl.cdiv(M, tm)
    out = pl.pallas_call(
        _window_max_kernel,
        out_shape=jax.ShapeDtypeStruct((M, C), x.dtype),
        grid=(gm,),
        in_specs=[pl.BlockSpec((tm, 9, C), lambda i: (i, 0, 0))],
        out_specs=pl.BlockSpec((tm, C), lambda i: (i, 0)),
        compiler_params=pltpu.CompilerParams(dimension_semantics=("parallel",)),
    )(pm)
    return out.reshape(B, Ho, Wo, C)


def global_avg_pool(x):
    """AdaptiveAvgPool2d((1,1)) + flatten -> (B, C) in f32."""
    B, H, W, C = x.shape
    xr = x.reshape(B, H * W, C)
    tb = 8 if B > 8 else B
    gb = pl.cdiv(B, tb)
    return pl.pallas_call(
        _global_avg_kernel,
        out_shape=jax.ShapeDtypeStruct((B, C), jnp.float32),
        grid=(gb,),
        in_specs=[pl.BlockSpec((tb, H * W, C), lambda i: (i, 0, 0))],
        out_specs=pl.BlockSpec((tb, C), lambda i: (i, 0)),
        compiler_params=pltpu.CompilerParams(dimension_semantics=("parallel",)),
    )(xr)


# --------------------------- parameter creation ------------------------------

def _conv_params(key, kh, kw, cin, cout, cin_pad=0, cout_pad=0):
    k1, k2, k3 = jax.random.split(key, 3)
    fan_in = kh * kw * cin
    w = jax.random.normal(k1, (kh, kw, cin, cout), jnp.float32) * math.sqrt(2.0 / fan_in)
    # Frozen eval-mode BatchNorm (running_mean=0, running_var=1; mildly randomized gamma/beta)
    # folded directly into the conv weights + a per-channel bias.
    gamma = 1.0 + 0.1 * jax.random.normal(k2, (cout,), jnp.float32)
    beta = 0.1 * jax.random.normal(k3, (cout,), jnp.float32)
    mean = jnp.zeros((cout,), jnp.float32)
    var = jnp.ones((cout,), jnp.float32)
    eps = 1e-5
    scale = gamma / jnp.sqrt(var + eps)
    bias = beta - mean * scale
    w = w * scale[None, None, None, :]
    # Zero-padding of channels is mathematically a no-op (padded inputs are 0, padded
    # outputs have zero weight & bias) but makes the stores lane-dense (multiple of 128).
    if cin_pad:
        w = jnp.pad(w, ((0, 0), (0, 0), (0, cin_pad), (0, 0)))
    if cout_pad:
        w = jnp.pad(w, ((0, 0), (0, 0), (0, 0), (0, cout_pad)))
        bias = jnp.pad(bias, ((0, cout_pad),))
    return {"w": w.astype(jnp.bfloat16), "bias": bias.astype(jnp.float32)}


def _bottleneck_params(key, cin, cmid, cout, stride, cin_pad=0):
    ks = jax.random.split(key, 4)
    p = {
        "conv1": _conv_params(ks[0], 1, 1, cin, cmid, cin_pad=cin_pad),
        "conv2": _conv_params(ks[1], 3, 3, cmid, cmid),
        "conv3": _conv_params(ks[2], 1, 1, cmid, cout),
        "stride": stride,
        "downsample": None,
    }
    if stride != 1 or cin != cout:
        p["downsample"] = _conv_params(ks[3], 1, 1, cin, cout, cin_pad=cin_pad)
    return p


def init_encoder_params(key, embed_size):
    keys = jax.random.split(key, 7)
    stem_cout, stem_pad = 64, 64   # stem output channel-padded 64 -> 128 (lane-dense)
    params = {"conv1": _conv_params(keys[0], 7, 7, 3, stem_cout, cout_pad=stem_pad)}
    # TODO(synk): the 7x7 stem has K = 7*7*3 = 147 (MXU pads to the next K granule); a
    #             space-to-depth repack would make it lane-friendlier.
    layer_cfg = [  # (num_blocks, cmid, cout, first_stride) -- torchvision ResNet-50
        (3, 64, 256, 1),
        (4, 128, 512, 2),
        (6, 256, 1024, 2),
        (3, 512, 2048, 2),
    ]
    cin = stem_cout
    for li, (nb, cmid, cout, stride) in enumerate(layer_cfg):
        bkeys = jax.random.split(keys[1 + li], nb)
        blocks = []
        for bi in range(nb):
            s = stride if bi == 0 else 1
            pad_in = stem_pad if (li == 0 and bi == 0) else 0
            blocks.append(_bottleneck_params(bkeys[bi], cin, cmid, cout, s, cin_pad=pad_in))
            cin = cout
        params[f"layer{li + 1}"] = blocks
    # embed = nn.Linear(resnet.fc.in_features=2048, embed_size)
    bound = 1.0 / math.sqrt(2048.0)
    params["embed_w"] = jax.random.uniform(keys[5], (2048, embed_size), jnp.float32,
                                           -bound, bound).astype(jnp.bfloat16)
    params["embed_b"] = jax.random.uniform(keys[6], (embed_size,), jnp.float32,
                                           -bound, bound)
    return params


# ------------------------------ forward pass ---------------------------------

def bottleneck_forward(x, p):
    identity = x
    out = conv_bn(x, p["conv1"]["w"], p["conv1"]["bias"], stride=1, pad=0, relu=True)
    out = conv_bn(out, p["conv2"]["w"], p["conv2"]["bias"],
                  stride=p["stride"], pad=1, relu=True)
    out = conv_bn(out, p["conv3"]["w"], p["conv3"]["bias"], stride=1, pad=0, relu=False)
    if p["downsample"] is not None:
        identity = conv_bn(x, p["downsample"]["w"], p["downsample"]["bias"],
                           stride=p["stride"], pad=0, relu=False)
    B, H, W, C = out.shape
    res = add_relu(out.reshape(B * H * W, C), identity.reshape(B * H * W, C))
    return res.reshape(B, H, W, C)


def encoder_cnn_forward(images_nchw, params):
    # layout: accept NCHW like PyTorch, convert once to NHWC bf16 for the kernels.
    x = jnp.transpose(images_nchw, (0, 2, 3, 1)).astype(jnp.bfloat16)

    # stem: conv 7x7/s2 + BN + ReLU + maxpool 3x3/s2
    p = params["conv1"]
    x = conv_bn(x, p["w"], p["bias"], stride=2, pad=3, relu=True)
    x = max_pool_3x3_s2(x)

    # layer1..layer4
    for li in range(1, 5):
        for bp in params[f"layer{li}"]:
            x = bottleneck_forward(x, bp)

    # adaptive avg pool (1,1) + flatten, then embed Linear
    feat = global_avg_pool(x)                       # (B, 2048) f32
    out = matmul_affine(feat.astype(jnp.bfloat16), params["embed_w"],
                        params["embed_b"], relu=False, out_dtype=jnp.float32)
    return out                                      # (B, embed_size)


# ---------------------------------- main --------------------------------------

if __name__ == "__main__":
    key = jax.random.PRNGKey(0)
    k_img, k_params = jax.random.split(key)

    embed_size = 64
    # Small but ResNet-50-consistent input: batch=2, 3 channels, 64x64 spatial (NCHW).
    images = jax.random.normal(k_img, (2, 3, 64, 64), jnp.float32)
    params = init_encoder_params(k_params, embed_size)

    feats = encoder_cnn_forward(images, params)
    feats = jax.block_until_ready(feats)

    assert feats.shape == (2, embed_size), feats.shape
    assert bool(jnp.all(jnp.isfinite(feats)))
    print("KERNEL_OK")
</pallas_src>

<mosaic_0001>
module attributes {stable_mosaic.version = 11 : i64} {
  func.func @_matmul_bias_kernel(%arg0: i32, %arg1: i32, %arg2: memref<512x147xbf16, #tpu.memory_space<vmem>>, %arg3: memref<147x128xbf16, #tpu.memory_space<vmem>>, %arg4: memref<1x128xf32, #tpu.memory_space<vmem>>, %arg5: memref<512x128xbf16, #tpu.memory_space<vmem>>, %arg6: memref<512x128xf32, #tpu.memory_space<vmem>>) attributes {dimension_semantics = [#tpu.dimension_semantics<parallel>, #tpu.dimension_semantics<arbitrary>], iteration_bounds = array<i64: 4, 1>, scalar_prefetch = 0 : i64, scratch_operands = 1 : i64, tpu.core_type = #tpu.core_type<tc>, window_params = [{transform_indices = @transform_0, window_bounds = array<i64: 512, 147>}, {transform_indices = @transform_1, window_bounds = array<i64: 147, 128>}, {pipeline_mode = #tpu.pipeline_mode<synchronous>, transform_indices = @transform_2, window_bounds = array<i64: 1, 128>}, {transform_indices = @transform_3, window_bounds = array<i64: 512, 128>}]} {
    %c0_i32 = arith.constant 0 : i32
    %0 = arith.cmpi eq, %arg1, %c0_i32 : i32
    %1 = arith.extui %0 : i1 to i32
    %c0_i32_0 = arith.constant 0 : i32
    %2 = arith.cmpi ne, %1, %c0_i32_0 : i32
    scf.if %2 {
      %cst_10 = arith.constant 0.000000e+00 : f32
      %12 = vector.broadcast %cst_10 : f32 to vector<512x128xf32>
      %c0_11 = arith.constant 0 : index
      %c0_12 = arith.constant 0 : index
      %13 = vector.load %arg6[%c0_11, %c0_12] : memref<512x128xf32, #tpu.memory_space<vmem>>, vector<512x128xf32>
      tpu.vector_store %arg6[%c0_11, %c0_12], %12 {strides = array<i32>} : memref<512x128xf32, #tpu.memory_space<vmem>>, vector<512x128xf32>,
    } else {
    }
    %c0 = arith.constant 0 : index
    %c0_1 = arith.constant 0 : index
    %3 = vector.load %arg6[%c0, %c0_1] : memref<512x128xf32, #tpu.memory_space<vmem>>, vector<512x128xf32>
    %c0_2 = arith.constant 0 : index
    %c0_3 = arith.constant 0 : index
    %4 = vector.load %arg2[%c0_2, %c0_3] : memref<512x147xbf16, #tpu.memory_space<vmem>>, vector<512x147xbf16>
    %c0_4 = arith.constant 0 : index
    %c0_5 = arith.constant 0 : index
    %5 = vector.load %arg3[%c0_4, %c0_5] : memref<147x128xbf16, #tpu.memory_space<vmem>>, vector<147x128xbf16>
    %cst = arith.constant dense<0.000000e+00> : vector<512x128xf32>
    %6 = tpu.matmul %4, %5, %cst {dimension_numbers = #tpu.dot_dimension_numbers<[1], [0], [0], [1], [0, 0, 1, 1], [], []>} : vector<512x147xbf16>, vector<147x128xbf16>, vector<512x128xf32> -> vector<512x128xf32>
    %7 = arith.addf %3, %6 : vector<512x128xf32>
    %c0_6 = arith.constant 0 : index
    %c0_7 = arith.constant 0 : index
    %8 = vector.load %arg6[%c0_6, %c0_7] : memref<512x128xf32, #tpu.memory_space<vmem>>, vector<512x128xf32>
    tpu.vector_store %arg6[%c0_6, %c0_7], %7 {strides = array<i32>} : memref<512x128xf32, #tpu.memory_space<vmem>>, vector<512x128xf32>,
    %c0_i32_8 = arith.constant 0 : i32
    %9 = arith.cmpi eq, %arg1, %c0_i32_8 : i32
    %10 = arith.extui %9 : i1 to i32
    %c0_i32_9 = arith.constant 0 : i32
    %11 = arith.cmpi ne, %10, %c0_i32_9 : i32
    scf.if %11 {
      %c0_10 = arith.constant 0 : index
      %c0_11 = arith.constant 0 : index
      %12 = vector.load %arg6[%c0_10, %c0_11] : memref<512x128xf32, #tpu.memory_space<vmem>>, vector<512x128xf32>
      %c0_12 = arith.constant 0 : index
      %c0_13 = arith.constant 0 : index
      %13 = vector.load %arg4[%c0_12, %c0_13] : memref<1x128xf32, #tpu.memory_space<vmem>>, vector<1x128xf32>
      %14 = vector.broadcast %13 : vector<1x128xf32> to vector<512x128xf32>
      %15 = arith.addf %12, %14 : vector<512x128xf32>
      %cst_14 = arith.constant 0.000000e+00 : f32
      %16 = vector.broadcast %cst_14 : f32 to vector<512x128xf32>
      %17 = arith.maximumf %15, %16 : vector<512x128xf32>
      %18 = arith.truncf %17 : vector<512x128xf32> to vector<512x128xbf16>
      %c0_15 = arith.constant 0 : index
      %c0_16 = arith.constant 0 : index
      %19 = vector.load %arg5[%c0_15, %c0_16] : memref<512x128xbf16, #tpu.memory_space<vmem>>, vector<512x128xbf16>
      tpu.vector_store %arg5[%c0_15, %c0_16], %18 {strides = array<i32>} : memref<512x128xbf16, #tpu.memory_space<vmem>>, vector<512x128xbf16>,
    } else {
    }
    return
  }
  func.func @transform_0(%arg0: i32, %arg1: i32) -> (i32, i32) {
    %c0_i32 = arith.constant 0 : i32
    return %arg0, %arg1 : i32, i32
  }
  func.func @transform_1(%arg0: i32, %arg1: i32) -> (i32, i32) {
    %c0_i32 = arith.constant 0 : i32
    %c0_i32_0 = arith.constant 0 : i32
    return %arg1, %c0_i32 : i32, i32
  }
  func.func @transform_2(%arg0: i32, %arg1: i32) -> (i32, i32) {
    %c0_i32 = arith.constant 0 : i32
    %c0_i32_0 = arith.constant 0 : i32
    %c0_i32_1 = arith.constant 0 : i32
    return %c0_i32, %c0_i32_0 : i32, i32
  }
  func.func @transform_3(%arg0: i32, %arg1: i32) -> (i32, i32) {
    %c0_i32 = arith.constant 0 : i32
    %c0_i32_0 = arith.constant 0 : i32
    return %arg0, %c0_i32 : i32, i32
  }
}

</mosaic_0001>

<bundles_post_ra>
// kernel: tpu_custom_call.1
= control target key start
LH: loop header
LB: loop body
LE: loop exit
PB: predicated region body
PF: predicated region fallthrough
CT: control target
= control target key end

     0   :  { %8 = vsyncpa [#allocation4], 0  ;;  %s3011_s0 = inlined_call_operand.vmem [shape: bf16[2048,147], index: 0, kind: input, shape index: {}]   ;;  %s3012_s1 = inlined_call_operand.vmem [shape: bf16[147,128], index: 1, kind: input, shape index: {}]   ;;  %s3013_s2 = inlined_call_operand.vmem [shape: f32[1,128], index: 2, kind: input, shape index: {}]   ;;  %s3014_s3 = inlined_call_operand.hbm [shape: bf16[2048,128], index: 3, kind: output, shape index: {}]  }
   0x1   :  { %10 = vsyncpa [#allocation4 + $0x1], 0  ;;  %s2567_s12 = smov 0   ;;  %s2569_s13 = smov 0  }
   0x2   :  { %s2571_s14 = smov 0   ;;  %s2573_s15 = smov 0  }
   0x3   :  { %s2575_s16 = smov 0   ;;  %s2577_s17 = smov 0  }
   0x4 LB: > { %s1790_s18 = sadd.s32 4294967295, %s2542_s17   ;;  %s1791_s19 = sadd.s32 4294967294, %s2542_s17   ;;  %s2542_s17 = sphi %s2577_s17, %s16_s17   ;;  %s2538_s16 = sphi %s2575_s16, %s3021_s16   ;;  %s2534_s15 = sphi %s2573_s15, %s3020_s15   ;;  %s2530_s14 = sphi %s2571_s14, %s3019_s14   ;;  %s2526_s13 = sphi %s2569_s13, %s3018_s13   ;;  %s2522_s12 = sphi %s2567_s12, %s3017_s12  }
   0x5   : > { %s28_s20 = sadd.s32 1, %s2538_s16  ;;  %s110_s21 = sadd.s32 1, %s2530_s14 }
   0x6   : > { %p30_p0 = scmp.ge.s32.totalorder %s28_s20, 4  ;;  %p120_p1 = scmp.ne.s32.totalorder %s2530_s14, %s2526_s13 }
   0x7   : > { %p121_p2 = scmp.eq.s32.totalorder %s1790_s18, 3  ;;  %p126_p3 = scmp.ne.s32.totalorder %s2526_s13, %s2522_s12 }
   0x8   : > { %s3023_s20 = smov (%p30_p0, %s28_s20), 0  ;;  %p127_p5 = scmp.eq.s32.totalorder %s1791_s19, 3 }
   0x9   : > { %p2607_p4 = por %p121_p2, %p120_p1  ;;  %s107_s23 = ssub.s32 %s2538_s16, %s3023_s20 }
   0xa   : > { %p1795_p6 = scmp.ge.s32.totalorder %s2542_s17, 1  ;;  %p108_p7 = scmp.eq.s32.totalorder %s107_s23, 0 }
   0xb   : > { %p2614_p8 = por %p127_p5, %p126_p3  ;;  %p172_p9 = scmp.lt.s32.totalorder %s2542_s17, 5 }
   0xc   : > { %s2620_s25 = scalar_select %p108_p7, %s2530_s14, %s110_s21  }
   0xd   : > { %p173_p10 = pnand %p1795_p6, %p172_p9 }
   0xe   : > { %s1797_s30 = sshll.u32 (!%p173_p10), %s2534_s15, 6  ;;  %s203_s9 = sand.u32 (!%p173_p10), 1, %s2526_s13  }
   0xf   : > { %176 = sbr.rel (%p173_p10) target bundleno = 444 (0x1bc), region = 32  ;;  %p208_p11 = scmp.lt.s32.totalorder (!%p173_p10), %s1797_s30, 255 }
  0x10   : > { %s1796_s10 = sshll.u32 (!%p173_p10), %s203_s9, 8  ;;  %s2203_s18 = sshll.u32 (!%p173_p10), %s2534_s15, 8 }
  0x11   : > { %s2785_s11 = scalar_lea.vmem (!%p173_p10), [#allocation3], %s1796_s10  ;;  %s1695_s23 = scalar_lea.hbm (!%p173_p10), %s3014_s3, %s2203_s18 }
  0x12   : > { %s1696_s15 = sshll.u32 (!%p173_p10), %s2785_s11, 4  ;;  %s1698_s26 = sshll.u32 (!%p173_p10), %s1695_s23, 4  ;;  %s1697_s15 = int_to_ptr.vmem [resolvable:$true] %s1696_s15  ;;  %s1699_s26 = int_to_ptr.hbm [resolvable:$true] %s1698_s26 }
  0x13   : > { %s1684_s27 = scalar_lea.sflag (!%p173_p10), [#allocation4], %s203_s9  ;;  %s2478_s28 = sshra.s32 (!%p173_p10), %s1699_s26, 4  ;;  %s2479_s28 = int_to_ptr.hbm [resolvable:$true] %s2478_s28 }
  0x14   : > { %v2201_v0 = vld [vmem:[%s3012_s1 + $0x38] sm:$0xff]  ;;  %v440_v1 = vld [vmem:[%s3012_s1 + $0x48] sm:$0x3]  ;;  %vm883_vm0 = vcmask 1040384   ;;  %vm884_vm1 = vcmask 1041408   ;;  %v2200_v3 = vld [vmem:[%s3012_s1 + $0x30] sm:$0xff]  ;;  %p2485_p1 = scmp.lt.s32.totalorder %s2479_s28, %s3014_s3 }
  0x15   : > { %v766_v2 = vunpack.c.l.b16 %v440_v1  ;;  %890 = vmatpush.bf16.msra.mxu0 %v2201_v0  ;;  %2395 = vmatpush.bf16.msra.mxu2 %v2201_v0  ;;  %v2544_v4 = vmov 65535   ;;  %s3025_s30 = smov (!%p208_p11, %s1797_s30), 255  ;;  %v2199_v9 = vld [vmem:[%s3012_s1 + $0x28] sm:$0xff]  ;;  %v2202_v10 = vld [vmem:[%s3012_s1 + $0x40] sm:$0xff]  ;;  %vm786_vm2 = vcmask 154624   ;;  %v2197_v18 = vld [vmem:[%s3012_s1 + $0x18] sm:$0xff] }
  0x16   : > { %v885_v5 = vsel %vm883_vm0, 4294967295, %v2544_v4  ;;  %s2129_s8 = sshll.u32 %s3025_s30, 3  ;;  %v2198_v14 = vld [vmem:[%s3012_s1 + $0x20] sm:$0xff]  ;;  %v2196_v19 = vld [vmem:[%s3012_s1 + $0x10] sm:$0xff]  ;;  %v2195_v20 = vld [vmem:[%s3012_s1 + $0x8] sm:$0xff]  ;;  %s2480_s29 = scalar_lea.hbm %s2479_s28, 256 }
  0x17   : > { %v776_v6 = vpack.c.b16 %v766_v2, %v766_v2  ;;  %v886_v7 = vsel %vm884_vm1, %v885_v5, 0  ;;  %s2641_s19 = scalar_lea.vmem %s3011_s0, %s2129_s8  ;;  %v2194_v26 = vld [vmem:[%s3012_s1] sm:$0xff]  ;;  %p2481_p12 = scmp.ne.s32.totalorder %s2479_s28, %s2480_s29 }
  0x18   : > { %v2130_v11 = vld [vmem:[%s2641_s19 + $0x4] sm:$0xf]  ;;  %v1804_v12 = vld [vmem:[%s2641_s19 + $0x8] sm:$0xf0]  ;;  %v2164_v15 = vld [vmem:[%s2641_s19 + $0x114] sm:$0xf] }
  0x19   : > { %v888_v8 = vand.u32 %v886_v7, %v776_v6  ;;  %891 = vmatpush.bf16.msra.mxu0 %v2200_v3  ;;  %2396 = vmatpush.bf16.msra.mxu2 %v2200_v3  ;;  %v1807_v13 = vor.u32 %v2130_v11, %v1804_v12  ;;  %v1940_v16 = vld [vmem:[%s2641_s19 + $0x118] sm:$0xf0]  ;;  %v2132_v21 = vld [vmem:[%s2641_s19 + $0x14] sm:$0xf]  ;;  %v2166_v23 = vld [vmem:[%s2641_s19 + $0x124] sm:$0xf]  ;;  %p2482_p13 = pnand %p2481_p12, %p2607_p4 }
  0x1a   : > { %v1943_v17 = vor.u32 %v2164_v15, %v1940_v16  ;;  %v1812_v22 = vld [vmem:[%s2641_s19 + $0x18] sm:$0xf0]  ;;  %v1948_v24 = vld [vmem:[%s2641_s19 + $0x128] sm:$0xf0]  ;;  %v1802_v27 = vld [vmem:[%s2641_s19] sm:$0xf] }
  0x1b   : > { %1065 = vmatpush.bf16.msra.mxu1 %v888_v8  ;;  %2403 = vmatpush.bf16.msra.mxu3 %v888_v8  ;;  %v1815_v25 = vor.u32 %v2132_v21, %v1812_v22  ;;  %v2131_v28 = vld [vmem:[%s2641_s19 + $0x4] sm:$0xf0]  ;;  %v1930_v29 = vld [vmem:[%s2641_s19 + $0x100] sm:$0xf]  ;;  %v1951_v31 = vor.u32 %v2166_v23, %v1948_v24  ;;  %v2134_v34 = vld [vmem:[%s2641_s19 + $0x24] sm:$0xf]  ;;  %p2483_p0 = pneg %p2482_p13 }
  0x1c   : > { %v2163_v30 = vld [vmem:[%s2641_s19 + $0x104] sm:$0xf0]  ;;  %v1803_v32 = vor.u32 %v2131_v28, %v1802_v27  ;;  %v1820_v35 = vld [vmem:[%s2641_s19 + $0x28] sm:$0xf0]  ;;  %v2168_v36 = vld [vmem:[%s2641_s19 + $0x134] sm:$0xf] }
  0x1d   : > { %892 = vmatpush.bf16.msra.mxu0 %v2199_v9  ;;  %2397 = vmatpush.bf16.msra.mxu2 %v2199_v9  ;;  %v1931_v33 = vor.u32 %v2163_v30, %v1930_v29  ;;  %v1956_v37 = vld [vmem:[%s2641_s19 + $0x138] sm:$0xf0]  ;;  %v1823_v38 = vor.u32 %v2134_v34, %v1820_v35  ;;  %v1810_v39 = vld [vmem:[%s2641_s19 + $0x10] sm:$0xf]  ;;  %v2133_v40 = vld [vmem:[%s2641_s19 + $0x14] sm:$0xf0] }
  0x1e   : > { %v1938_v41 = vld [vmem:[%s2641_s19 + $0x110] sm:$0xf]  ;;  %v2165_v42 = vld [vmem:[%s2641_s19 + $0x114] sm:$0xf0]  ;;  %v1959_v43 = vor.u32 %v2168_v36, %v1956_v37  ;;  %v1811_v44 = vor.u32 %v2133_v40, %v1810_v39  ;;  %v2136_v46 = vld [vmem:[%s2641_s19 + $0x34] sm:$0xf] }
  0x1f   : > { %1066 = vmatpush.bf16.msra.mxu1 %v2202_v10  ;;  %2404 = vmatpush.bf16.msra.mxu3 %v2202_v10  ;;  %v1939_v45 = vor.u32 %v2165_v42, %v1938_v41  ;;  %v1828_v47 = vld [vmem:[%s2641_s19 + $0x38] sm:$0xf0]  ;;  %v2170_v48 = vld [vmem:[%s2641_s19 + $0x144] sm:$0xf]  ;;  %v1964_v49 = vld [vmem:[%s2641_s19 + $0x148] sm:$0xf0] }
  0x20   : > { %v1831_v50 = vor.u32 %v2136_v46, %v1828_v47  ;;  %v1818_v51 = vld [vmem:[%s2641_s19 + $0x20] sm:$0xf]  ;;  %v2135_v52 = vld [vmem:[%s2641_s19 + $0x24] sm:$0xf0]  ;;  %v1967_v55 = vor.u32 %v2170_v48, %v1964_v49  ;;  %v2138_v58 = vld [vmem:[%s2641_s19 + $0x44] sm:$0xf] }
  0x21   : > { %893 = vmatpush.bf16.msra.mxu0 %v2198_v14  ;;  %2398 = vmatpush.bf16.msra.mxu2 %v2198_v14  ;;  %v1946_v53 = vld [vmem:[%s2641_s19 + $0x120] sm:$0xf]  ;;  %v2167_v54 = vld [vmem:[%s2641_s19 + $0x124] sm:$0xf0]  ;;  %v1819_v56 = vor.u32 %v2135_v52, %v1818_v51  ;;  %v1836_v59 = vld [vmem:[%s2641_s19 + $0x48] sm:$0xf0] }
  0x22   : > { %2092 = vmatmul.msk.bf16.vlgmr.msra.gmra.mxu1 %vm786_vm2, %v1807_v13  ;;  %2109 = vmatmul.msk.bf16.vlgmr.msra.gmra.mxu3 %vm786_vm2, %v1943_v17  ;;  %v1947_v57 = vor.u32 %v2167_v54, %v1946_v53  ;;  %v2172_v60 = vld [vmem:[%s2641_s19 + $0x154] sm:$0xf]  ;;  %v1972_v61 = vld [vmem:[%s2641_s19 + $0x158] sm:$0xf0]  ;;  %v1839_v62 = vor.u32 %v2138_v58, %v1836_v59  ;;  %v1826_v63 = vld [vmem:[%s2641_s19 + $0x30] sm:$0xf] }
  0x23   : > { %v2137_v0 = vld [vmem:[%s2641_s19 + $0x34] sm:$0xf0]  ;;  %v1954_v1 = vld [vmem:[%s2641_s19 + $0x130] sm:$0xf]  ;;  %v1975_v3 = vor.u32 %v2172_v60, %v1972_v61  ;;  %v2140_v6 = vld [vmem:[%s2641_s19 + $0x54] sm:$0xf] }
  0x24   : > { %v2169_v2 = vld [vmem:[%s2641_s19 + $0x134] sm:$0xf0]  ;;  %v1827_v4 = vor.u32 %v2137_v0, %v1826_v63  ;;  %v1844_v7 = vld [vmem:[%s2641_s19 + $0x58] sm:$0xf0]  ;;  %v2174_v8 = vld [vmem:[%s2641_s19 + $0x164] sm:$0xf] }
  0x25   : > { %894 = vmatpush.bf16.msra.mxu0 %v2197_v18  ;;  %2399 = vmatpush.bf16.msra.mxu2 %v2197_v18  ;;  %v1955_v5 = vor.u32 %v2169_v2, %v1954_v1  ;;  %v1980_v9 = vld [vmem:[%s2641_s19 + $0x168] sm:$0xf0]  ;;  %v1847_v10 = vor.u32 %v2140_v6, %v1844_v7  ;;  %v1834_v11 = vld [vmem:[%s2641_s19 + $0x40] sm:$0xf]  ;;  %v2139_v12 = vld [vmem:[%s2641_s19 + $0x44] sm:$0xf0] }
  0x26   : > { %v1962_v13 = vld [vmem:[%s2641_s19 + $0x140] sm:$0xf]  ;;  %v2171_v14 = vld [vmem:[%s2641_s19 + $0x144] sm:$0xf0]  ;;  %v1983_v15 = vor.u32 %v2174_v8, %v1980_v9  ;;  %v1835_v16 = vor.u32 %v2139_v12, %v1834_v11  ;;  %v2142_v18 = vld [vmem:[%s2641_s19 + $0x64] sm:$0xf] }
  0x27   : > { %v1963_v17 = vor.u32 %v2171_v14, %v1962_v13  ;;  %v1988_v21 = vld [vmem:[%s2641_s19 + $0x178] sm:$0xf0]  ;;  %v1842_v23 = vld [vmem:[%s2641_s19 + $0x50] sm:$0xf]  ;;  %v2141_v24 = vld [vmem:[%s2641_s19 + $0x54] sm:$0xf0] }
  0x28   : > { %v1843_v28 = vor.u32 %v2141_v24, %v1842_v23  ;;  %v2144_v30 = vld [vmem:[%s2641_s19 + $0x74] sm:$0xf]  ;;  %v1850_v35 = vld [vmem:[%s2641_s19 + $0x60] sm:$0xf]  ;;  %v2143_v36 = vld [vmem:[%s2641_s19 + $0x64] sm:$0xf0] }
  0x29   : > { %895 = vmatpush.bf16.msra.mxu0 %v2196_v19  ;;  %2400 = vmatpush.bf16.msra.mxu2 %v2196_v19  ;;  %v1852_v19 = vld [vmem:[%s2641_s19 + $0x68] sm:$0xf0]  ;;  %v1978_v37 = vld [vmem:[%s2641_s19 + $0x160] sm:$0xf]  ;;  %v1851_v40 = vor.u32 %v2143_v36, %v1850_v35  ;;  %v2146_v42 = vld [vmem:[%s2641_s19 + $0x84] sm:$0xf] }
  0x2a   : > { %v1855_v22 = vor.u32 %v2142_v18, %v1852_v19  ;;  %v1858_v47 = vld [vmem:[%s2641_s19 + $0x70] sm:$0xf]  ;;  %v2145_v48 = vld [vmem:[%s2641_s19 + $0x74] sm:$0xf0]  ;;  %v1876_v58 = vld [vmem:[%s2641_s19 + $0x98] sm:$0xf0] }
  0x2b   : > { %v2177_v51 = vld [vmem:[%s2641_s19 + $0x174] sm:$0xf0]  ;;  %v1859_v53 = vor.u32 %v2145_v48, %v1858_v47  ;;  %v2182_v59 = vld [vmem:[%s2641_s19 + $0x1a4] sm:$0xf]  ;;  %v2012_v60 = vld [vmem:[%s2641_s19 + $0x1a8] sm:$0xf0] }
  0x2c   : > { %v2147_v63 = vld [vmem:[%s2641_s19 + $0x84] sm:$0xf0]  ;;  %v1994_v2 = vld [vmem:[%s2641_s19 + $0x180] sm:$0xf]  ;;  %v2184_v18 = vld [vmem:[%s2641_s19 + $0x1b4] sm:$0xf] }
  0x2d   : > { %896 = vmatpush.bf16.msra.mxu0 %v2195_v20  ;;  %2401 = vmatpush.bf16.msra.mxu2 %v2195_v20  ;;  %v2176_v20 = vld [vmem:[%s2641_s19 + $0x174] sm:$0xf]  ;;  %v2020_v19 = vld [vmem:[%s2641_s19 + $0x1b8] sm:$0xf0]  ;;  %v2149_v23 = vld [vmem:[%s2641_s19 + $0x94] sm:$0xf0] }
  0x2e   : > { %v1991_v27 = vor.u32 %v2176_v20, %v1988_v21  ;;  %s2484_s5 = scalar_lea.hbm %s3014_s3, 1024 }
  0x2f   : > { %p2486_p2 = scmp.lt.s32.totalorder %s2484_s5, %s2480_s29 }
  0x31   : > { %897 = vmatpush.bf16.msra.mxu0 %v2194_v26  ;;  %2402 = vmatpush.bf16.msra.mxu2 %v2194_v26  ;;  %v2173_v26 = vld [vmem:[%s2641_s19 + $0x154] sm:$0xf0]  ;;  %p2487_p3 = por %p2486_p2, %p2485_p1 }
  0x32   : > { %2093 = vmatmul.msk.bf16.gmra.mxu1 %vm786_vm2, %v1815_v25  ;;  %2110 = vmatmul.msk.bf16.gmra.mxu3 %vm786_vm2, %v1951_v31  ;;  %v1970_v25 = vld [vmem:[%s2641_s19 + $0x150] sm:$0xf]  ;;  %v1860_v31 = vld [vmem:[%s2641_s19 + $0x78] sm:$0xf0] }
  0x33   : > { %v1971_v29 = vor.u32 %v2173_v26, %v1970_v25  ;;  %v1863_v34 = vor.u32 %v2144_v30, %v1860_v31  ;;  %v2023_v30 = vor.u32 %v2184_v18, %v2020_v19  ;;  %v2188_v18 = vld [vmem:[%s2641_s19 + $0x1d4] sm:$0xf]  ;;  %v2036_v19 = vld [vmem:[%s2641_s19 + $0x1d8] sm:$0xf0]  ;;  %p2488_p5 = pnand %p2487_p3, %p2483_p0 }
  0x34   : > { %898 = vmatmul.bf16.vlgmr.msra.gmra.mxu0 %v1803_v32  ;;  %978 = vmatmul.bf16.vlgmr.msra.gmra.mxu2 %v1931_v33  ;;  %v2178_v32 = vld [vmem:[%s2641_s19 + $0x184] sm:$0xf]  ;;  %v1996_v33 = vld [vmem:[%s2641_s19 + $0x188] sm:$0xf0] }
  0x35   : > { %v1999_v39 = vor.u32 %v2178_v32, %v1996_v33 }
  0x42   : > { %2094 = vmatmul.msk.bf16.gmra.mxu1 %vm786_vm2, %v1823_v38  ;;  %2111 = vmatmul.msk.bf16.gmra.mxu3 %vm786_vm2, %v1959_v43  ;;  %v2175_v38 = vld [vmem:[%s2641_s19 + $0x164] sm:$0xf0]  ;;  %v1868_v43 = vld [vmem:[%s2641_s19 + $0x88] sm:$0xf0] }
  0x43   : > { %v1979_v41 = vor.u32 %v2175_v38, %v1978_v37  ;;  %v1871_v46 = vor.u32 %v2146_v42, %v1868_v43  ;;  %v2152_v43 = vld [vmem:[%s2641_s19 + $0xb4] sm:$0xf] }
  0x44   : > { %903 = vmatmul.bf16.gmra.mxu0 %v1811_v44  ;;  %983 = vmatmul.bf16.gmra.mxu2 %v1939_v45  ;;  %v2180_v44 = vld [vmem:[%s2641_s19 + $0x194] sm:$0xf]  ;;  %v2004_v45 = vld [vmem:[%s2641_s19 + $0x198] sm:$0xf0] }
  0x45   : > { %v2007_v52 = vor.u32 %v2180_v44, %v2004_v45  ;;  %v1892_v44 = vld [vmem:[%s2641_s19 + $0xb8] sm:$0xf0]  ;;  %v2186_v45 = vld [vmem:[%s2641_s19 + $0x1c4] sm:$0xf] }
  0x52   : > { %2095 = vmatmul.msk.bf16.gmra.mxu1 %vm786_vm2, %v1831_v50  ;;  %2112 = vmatmul.msk.bf16.gmra.mxu3 %vm786_vm2, %v1967_v55  ;;  %v1986_v50 = vld [vmem:[%s2641_s19 + $0x170] sm:$0xf] }
  0x53   : > { %v1987_v54 = vor.u32 %v2177_v51, %v1986_v50  ;;  %v1882_v50 = vld [vmem:[%s2641_s19 + $0xa0] sm:$0xf]  ;;  %v2151_v51 = vld [vmem:[%s2641_s19 + $0xa4] sm:$0xf0] }
  0x54   : > { %908 = vmatmul.bf16.gmra.mxu0 %v1819_v56  ;;  %988 = vmatmul.bf16.gmra.mxu2 %v1947_v57  ;;  %v2148_v57 = vld [vmem:[%s2641_s19 + $0x94] sm:$0xf] }
  0x55   : > { %v1879_v61 = vor.u32 %v2148_v57, %v1876_v58  ;;  %v2010_v57 = vld [vmem:[%s2641_s19 + $0x1a0] sm:$0xf]  ;;  %v2183_v58 = vld [vmem:[%s2641_s19 + $0x1a4] sm:$0xf0] }
  0x62   : > { %2096 = vmatmul.msk.bf16.gmra.mxu1 %vm786_vm2, %v1839_v62  ;;  %2113 = vmatmul.msk.bf16.gmra.mxu3 %vm786_vm2, %v1975_v3  ;;  %v1866_v62 = vld [vmem:[%s2641_s19 + $0x80] sm:$0xf]  ;;  %v2179_v3 = vld [vmem:[%s2641_s19 + $0x184] sm:$0xf0] }
  0x63   : > { %v1995_v7 = vor.u32 %v2179_v3, %v1994_v2  ;;  %v2011_v2 = vor.u32 %v2183_v58, %v2010_v57  ;;  %v2044_v57 = vld [vmem:[%s2641_s19 + $0x1e8] sm:$0xf0] }
  0x64   : > { %913 = vmatmul.bf16.gmra.mxu0 %v1827_v4  ;;  %993 = vmatmul.bf16.gmra.mxu2 %v1955_v5  ;;  %v2015_v4 = vor.u32 %v2182_v59, %v2012_v60  ;;  %v1867_v5 = vor.u32 %v2147_v63, %v1866_v62  ;;  %v1883_v62 = vor.u32 %v2151_v51, %v1882_v50  ;;  %v2156_v51 = vld [vmem:[%s2641_s19 + $0xd4] sm:$0xf] }
  0x72   : > { %2097 = vmatmul.msk.bf16.gmra.mxu1 %vm786_vm2, %v1847_v10  ;;  %2114 = vmatmul.msk.bf16.gmra.mxu3 %vm786_vm2, %v1983_v15  ;;  %v2763_v10 = vld [vmem:[%s3013_s2] ss:$0 sm:$0xff] }
  0x74   : > { %918 = vmatmul.bf16.gmra.mxu0 %v1835_v16  ;;  %998 = vmatmul.bf16.gmra.mxu2 %v1963_v17  ;;  %v2150_v16 = vld [vmem:[%s2641_s19 + $0xa4] sm:$0xf]  ;;  %v1884_v17 = vld [vmem:[%s2641_s19 + $0xa8] sm:$0xf0] }
  0x75   : > { %v1887_v21 = vor.u32 %v2150_v16, %v1884_v17  ;;  %v2154_v16 = vld [vmem:[%s2641_s19 + $0xc4] sm:$0xf]  ;;  %v1900_v17 = vld [vmem:[%s2641_s19 + $0xc8] sm:$0xf0] }
  0x82   : > { %2098 = vmatmul.msk.bf16.gmra.mxu1 %vm786_vm2, %v1855_v22  ;;  %2115 = vmatmul.msk.bf16.gmra.mxu3 %vm786_vm2, %v1991_v27  ;;  %v1874_v22 = vld [vmem:[%s2641_s19 + $0x90] sm:$0xf] }
  0x83   : > { %v1875_v33 = vor.u32 %v2149_v23, %v1874_v22  ;;  %v1903_v22 = vor.u32 %v2154_v16, %v1900_v17  ;;  %v1890_v23 = vld [vmem:[%s2641_s19 + $0xb0] sm:$0xf] }
  0x84   : > { %923 = vmatmul.bf16.gmra.mxu0 %v1843_v28  ;;  %1003 = vmatmul.bf16.gmra.mxu2 %v1971_v29  ;;  %v2002_v28 = vld [vmem:[%s2641_s19 + $0x190] sm:$0xf]  ;;  %v2181_v29 = vld [vmem:[%s2641_s19 + $0x194] sm:$0xf0] }
  0x85   : > { %v2003_v35 = vor.u32 %v2181_v29, %v2002_v28 }
  0x92   : > { %2099 = vmatmul.msk.bf16.gmra.mxu1 %vm786_vm2, %v1863_v34  ;;  %2116 = vmatmul.msk.bf16.gmra.mxu3 %vm786_vm2, %v1999_v39 }
  0x94   : > { %928 = vmatmul.bf16.gmra.mxu0 %v1851_v40  ;;  %1008 = vmatmul.bf16.gmra.mxu2 %v1979_v41 }
  0x9f   : > { %v1068_v49 = vpop.f32.mrf.mxu1 }
  0xa2   : > { %2100 = vmatmul.msk.bf16.gmra.mxu1 %vm786_vm2, %v1871_v46  ;;  %2117 = vmatmul.msk.bf16.gmra.mxu3 %vm786_vm2, %v2007_v52  ;;  %v2028_v46 = vld [vmem:[%s2641_s19 + $0x1c8] sm:$0xf0] }
  0xa3   : > { %v2031_v59 = vor.u32 %v2186_v45, %v2028_v46 }
  0xa4   : > { %933 = vmatmul.bf16.gmra.mxu0 %v1859_v53  ;;  %1013 = vmatmul.bf16.gmra.mxu2 %v1987_v54 }
  0xa5   : > { %v2744_v55 = vpop.f32.mrf.mxu3 }
  0xa7   : > { %v1070_v56 = vpop.f32.mrf.mxu1 }
  0xad   : > { %v2752_v0 = vpop.f32.mrf.mxu3 }
  0xaf   : > { %v1073_v1 = vpop.f32.mrf.mxu1 }
  0xb1   : > { %v899_v6 = vpop.f32.mrf.mxu0 }
  0xb2   : > { %2101 = vmatmul.msk.bf16.gmra.mxu1 %vm786_vm2, %v1879_v61  ;;  %2118 = vmatmul.msk.bf16.gmra.mxu3 %vm786_vm2, %v2015_v4  ;;  %v1069_v9 = vadd.f32 %v1068_v49, %v899_v6  ;;  %v1895_v49 = vor.u32 %v2152_v43, %v1892_v44 }
  0xb4   : > { %938 = vmatmul.bf16.gmra.mxu0 %v1867_v5  ;;  %1018 = vmatmul.bf16.gmra.mxu2 %v1995_v7  ;;  %v1427_v14 = vadd.f32 %v2763_v10, %v1069_v9 }
  0xb5   : > { %v2758_v8 = vpop.f32.mrf.mxu3 }
  0xb6   : > { %v1491_v25 = vmax.f32 %v1427_v14, 0.0 }
  0xb7   : > { %v1075_v11 = vpop.f32.mrf.mxu1  ;;  %v2765_v12 = vpop.f32.mrf.mxu2 }
  0xb9   : > { %v901_v13 = vpop.f32.mrf.mxu0 }
  0xba   : > { %v1071_v15 = vadd.f32 %v1070_v56, %v901_v13 }
  0xbc   : > { %v1428_v20 = vadd.f32 %v2763_v10, %v1071_v15 }
  0xbd   : > { %v2778_v24 = vpop.f32.mrf.mxu3 }
  0xbe   : > { %v1492_v26 = vmax.f32 %v1428_v20, 0.0 }
  0xbf   : > { %v1078_v27 = vpop.f32.mrf.mxu1  ;;  %v2782_v32 = vpop.f32.mrf.mxu2 }
  0xc0   : > { %v2207_v31 = vpack.c.bf16 %v1492_v26, %v1491_v25  ;;  %v2153_v25 = vld [vmem:[%s2641_s19 + $0xb4] sm:$0xf0] }
  0xc1   : > { %v904_v34 = vpop.f32.mrf.mxu0 }
  0xc2   : > { %2102 = vmatmul.msk.bf16.gmra.mxu1 %vm786_vm2, %v1887_v21  ;;  %2208 = vst [vmem:[%s2785_s11] sm:$0xff] %v2207_v31   ;;  %2119 = vmatmul.msk.bf16.gmra.mxu3 %vm786_vm2, %v2023_v30  ;;  %v1074_v37 = vadd.f32 %v1073_v1, %v904_v34  ;;  %v2018_v30 = vld [vmem:[%s2641_s19 + $0x1b0] sm:$0xf]  ;;  %v2185_v31 = vld [vmem:[%s2641_s19 + $0x1b4] sm:$0xf0] }
  0xc4   : > { %943 = vmatmul.bf16.gmra.mxu0 %v1875_v33  ;;  %1023 = vmatmul.bf16.gmra.mxu2 %v2003_v35  ;;  %v1429_v41 = vadd.f32 %v2763_v10, %v1074_v37  ;;  %v2039_v33 = vor.u32 %v2188_v18, %v2036_v19  ;;  %v1891_v37 = vor.u32 %v2153_v25, %v1890_v23  ;;  %v2158_v25 = vld [vmem:[%s2641_s19 + $0xe4] sm:$0xf] }
  0xc5   : > { %v2789_v36 = vpop.f32.mrf.mxu3 }
  0xc6   : > { %v1493_v53 = vmax.f32 %v1429_v41, 0.0 }
  0xc7   : > { %v1080_v38 = vpop.f32.mrf.mxu1  ;;  %v984_v39 = vpop.f32.mrf.mxu2 }
  0xc8   : > { %v1154_v48 = vadd.f32 %v2744_v55, %v984_v39 }
  0xc9   : > { %v906_v40 = vpop.f32.mrf.mxu0 }
  0xca   : > { %v1076_v42 = vadd.f32 %v1075_v11, %v906_v40  ;;  %v1461_v63 = vadd.f32 %v2763_v10, %v1154_v48  ;;  %v2019_v40 = vor.u32 %v2185_v31, %v2018_v30  ;;  %v2052_v30 = vld [vmem:[%s2641_s19 + $0x1f8] sm:$0xf0] }
  0xcc   : > { %v1430_v47 = vadd.f32 %v2763_v10, %v1076_v42  ;;  %v1525_v4 = vmax.f32 %v1461_v63, 0.0 }
  0xcd   : > { %v2800_v52 = vpop.f32.mrf.mxu3 }
  0xce   : > { %v1494_v54 = vmax.f32 %v1430_v47, 0.0 }
  0xcf   : > { %v1083_v56 = vpop.f32.mrf.mxu1  ;;  %v986_v61 = vpop.f32.mrf.mxu2 }
  0xd0   : > { %v2212_v60 = vpack.c.bf16 %v1494_v54, %v1493_v53  ;;  %v1156_v1 = vadd.f32 %v2752_v0, %v986_v61  ;;  %v1908_v53 = vld [vmem:[%s2641_s19 + $0xd8] sm:$0xf0]  ;;  %v2190_v54 = vld [vmem:[%s2641_s19 + $0x1e4] sm:$0xf]  ;;  %v2155_v61 = vld [vmem:[%s2641_s19 + $0xc4] sm:$0xf0] }
  0xd1   : > { %v909_v55 = vpop.f32.mrf.mxu0 }
  0xd2   : > { %2103 = vmatmul.msk.bf16.gmra.mxu1 %vm786_vm2, %v1895_v49  ;;  %2364 = vst [vmem:[%s2785_s11 + $0x8] sm:$0xff] %v2212_v60   ;;  %2120 = vmatmul.msk.bf16.gmra.mxu3 %vm786_vm2, %v2031_v59  ;;  %v1462_v3 = vadd.f32 %v2763_v10, %v1156_v1  ;;  %v1079_v0 = vadd.f32 %v1078_v27, %v909_v55  ;;  %v1898_v60 = vld [vmem:[%s2641_s19 + $0xc0] sm:$0xf] }
  0xd4   : > { %948 = vmatmul.bf16.gmra.mxu0 %v1883_v62  ;;  %v1526_v5 = vmax.f32 %v1462_v3, 0.0  ;;  %1028 = vmatmul.bf16.gmra.mxu2 %v2011_v2  ;;  %v1431_v14 = vadd.f32 %v2763_v10, %v1079_v0  ;;  %v2026_v2 = vld [vmem:[%s2641_s19 + $0x1c0] sm:$0xf]  ;;  %v2187_v3 = vld [vmem:[%s2641_s19 + $0x1c4] sm:$0xf0] }
  0xd5   : > { %v2810_v6 = vpop.f32.mrf.mxu3 }
  0xd6   : > { %v2292_v9 = vpack.c.bf16 %v1526_v5, %v1525_v4  ;;  %v1495_v27 = vmax.f32 %v1431_v14, 0.0  ;;  %v2047_v4 = vor.u32 %v2190_v54, %v2044_v57 }
  0xd7   : > { %v1085_v7 = vpop.f32.mrf.mxu1  ;;  %v989_v11 = vpop.f32.mrf.mxu2 }
  0xd8   : > { %2380 = vst [vmem:[%s2785_s11 + $0x88] sm:$0xff] %v2292_v9   ;;  %v1159_v21 = vadd.f32 %v2758_v8, %v989_v11 }
  0xd9   : > { %v911_v13 = vpop.f32.mrf.mxu0 }
  0xda   : > { %v1081_v15 = vadd.f32 %v1080_v38, %v911_v13  ;;  %v1463_v38 = vadd.f32 %v2763_v10, %v1159_v21  ;;  %v2027_v13 = vor.u32 %v2187_v3, %v2026_v2 }
  0xdc   : > { %v1432_v20 = vadd.f32 %v2763_v10, %v1081_v15  ;;  %v1527_v42 = vmax.f32 %v1463_v38, 0.0 }
  0xdd   : > { %v2822_v26 = vpop.f32.mrf.mxu3 }
  0xde   : > { %v1496_v28 = vmax.f32 %v1432_v20, 0.0 }
  0xdf   : > { %v1088_v29 = vpop.f32.mrf.mxu1  ;;  %v991_v35 = vpop.f32.mrf.mxu2 }
  0xe0   : > { %v2217_v34 = vpack.c.bf16 %v1496_v28, %v1495_v27  ;;  %v1161_v39 = vadd.f32 %v2778_v24, %v991_v35  ;;  %v1916_v27 = vld [vmem:[%s2641_s19 + $0xe8] sm:$0xf0]  ;;  %v2192_v28 = vld [vmem:[%s2641_s19 + $0x1f4] sm:$0xf]  ;;  %v2157_v35 = vld [vmem:[%s2641_s19 + $0xd4] sm:$0xf0] }
  0xe1   : > { %v914_v8 = vpop.f32.mrf.mxu0 }
  0xe2   : > { %2104 = vmatmul.msk.bf16.gmra.mxu1 %vm786_vm2, %v1903_v22  ;;  %2365 = vst [vmem:[%s2785_s11 + $0x10] sm:$0xff] %v2217_v34   ;;  %2121 = vmatmul.msk.bf16.gmra.mxu3 %vm786_vm2, %v2039_v33  ;;  %v1464_v41 = vadd.f32 %v2763_v10, %v1161_v39  ;;  %v1084_v24 = vadd.f32 %v1083_v56, %v914_v8  ;;  %v1906_v34 = vld [vmem:[%s2641_s19 + $0xd0] sm:$0xf] }
  0xe3   : > { %v1911_v56 = vor.u32 %v2156_v51, %v1908_v53 }
  0xe4   : > { %953 = vmatmul.bf16.gmra.mxu0 %v1891_v37  ;;  %v1528_v43 = vmax.f32 %v1464_v41, 0.0  ;;  %1033 = vmatmul.bf16.gmra.mxu2 %v2019_v40  ;;  %v1433_v49 = vadd.f32 %v2763_v10, %v1084_v24  ;;  %v2034_v40 = vld [vmem:[%s2641_s19 + $0x1d0] sm:$0xf]  ;;  %v2189_v41 = vld [vmem:[%s2641_s19 + $0x1d4] sm:$0xf0] }
  0xe5   : > { %v2832_v44 = vpop.f32.mrf.mxu3 }
  0xe6   : > { %v2297_v46 = vpack.c.bf16 %v1528_v43, %v1527_v42  ;;  %v1497_v63 = vmax.f32 %v1433_v49, 0.0  ;;  %v2055_v42 = vor.u32 %v2192_v28, %v2052_v30 }
  0xe7   : > { %v1090_v45 = vpop.f32.mrf.mxu1  ;;  %v994_v47 = vpop.f32.mrf.mxu2 }
  0xe8   : > { %2381 = vst [vmem:[%s2785_s11 + $0x90] sm:$0xff] %v2297_v46   ;;  %v1164_v59 = vadd.f32 %v2789_v36, %v994_v47 }
  0xe9   : > { %v916_v48 = vpop.f32.mrf.mxu0 }
  0xea   : > { %v1086_v50 = vadd.f32 %v1085_v7, %v916_v48  ;;  %v1899_v7 = vor.u32 %v2155_v61, %v1898_v60  ;;  %v1465_v9 = vadd.f32 %v2763_v10, %v1164_v59  ;;  %v2035_v48 = vor.u32 %v2189_v41, %v2034_v40  ;;  %v2160_v61 = vld [vmem:[%s2641_s19 + $0xf4] sm:$0xf] }
  0xec   : > { %v1434_v58 = vadd.f32 %v2763_v10, %v1086_v50  ;;  %v1529_v15 = vmax.f32 %v1465_v9, 0.0  ;;  %v2042_v9 = vld [vmem:[%s2641_s19 + $0x1e0] sm:$0xf] }
  0xed   : > { %v2844_v62 = vpop.f32.mrf.mxu3 }
  0xee   : > { %v1498_v1 = vmax.f32 %v1434_v58, 0.0 }
  0xef   : > { %v1093_v55 = vpop.f32.mrf.mxu1  ;;  %v996_v0 = vpop.f32.mrf.mxu2 }
  0xf0   : > { %v2222_v5 = vpack.c.bf16 %v1498_v1, %v1497_v63  ;;  %v1166_v11 = vadd.f32 %v2800_v52, %v996_v0  ;;  %v1924_v63 = vld [vmem:[%s2641_s19 + $0xf8] sm:$0xf0] }
  0xf1   : > { %v919_v36 = vpop.f32.mrf.mxu0  ;;  %v1927_v3 = vor.u32 %v2160_v61, %v1924_v63 }
  0xf2   : > { %2105 = vmatmul.msk.bf16.gmra.mxu1 %vm786_vm2, %v1911_v56  ;;  %2366 = vst [vmem:[%s2785_s11 + $0x18] sm:$0xff] %v2222_v5   ;;  %2122 = vmatmul.msk.bf16.gmra.mxu3 %vm786_vm2, %v2047_v4  ;;  %v1466_v14 = vadd.f32 %v2763_v10, %v1166_v11  ;;  %v1089_v52 = vadd.f32 %v1088_v29, %v919_v36  ;;  %v2159_v4 = vld [vmem:[%s2641_s19 + $0xe4] sm:$0xf0] }
  0xf3   : > { %v1919_v29 = vor.u32 %v2158_v25, %v1916_v27  ;;  %v2191_v11 = vld [vmem:[%s2641_s19 + $0x1e4] sm:$0xf0] }
  0xf4   : > { %958 = vmatmul.bf16.gmra.mxu0 %v1899_v7  ;;  %v1530_v16 = vmax.f32 %v1466_v14, 0.0  ;;  %1038 = vmatmul.bf16.gmra.mxu2 %v2027_v13  ;;  %v1435_v22 = vadd.f32 %v2763_v10, %v1089_v52 }
  0xf5   : > { %v2854_v17 = vpop.f32.mrf.mxu3 }
  0xf6   : > { %v2302_v19 = vpack.c.bf16 %v1530_v16, %v1529_v15  ;;  %v1499_v38 = vmax.f32 %v1435_v22, 0.0 }
  0xf7   : > { %v1095_v18 = vpop.f32.mrf.mxu1  ;;  %v999_v20 = vpop.f32.mrf.mxu2 }
  0xf8   : > { %2382 = vst [vmem:[%s2785_s11 + $0x98] sm:$0xff] %v2302_v19   ;;  %v1169_v33 = vadd.f32 %v2810_v6, %v999_v20 }
  0xf9   : > { %v921_v21 = vpop.f32.mrf.mxu0 }
  0xfa   : > { %v1091_v23 = vadd.f32 %v1090_v45, %v921_v21  ;;  %v1907_v45 = vor.u32 %v2157_v35, %v1906_v34  ;;  %v1467_v46 = vadd.f32 %v2763_v10, %v1169_v33  ;;  %v1932_v33 = vld [vmem:[%s2641_s19 + $0x108] sm:$0xf0] }
  0xfc   : > { %v1436_v31 = vadd.f32 %v2763_v10, %v1091_v23  ;;  %v1531_v50 = vmax.f32 %v1467_v46, 0.0 }
  0xfd   : > { %v2866_v37 = vpop.f32.mrf.mxu3 }
  0xfe   : > { %v1500_v39 = vmax.f32 %v1436_v31, 0.0  ;;  %v2162_v31 = vld [vmem:[%s2641_s19 + $0x104] sm:$0xf] }
  0xff   : > { %v1098_v8 = vpop.f32.mrf.mxu1  ;;  %v1001_v24 = vpop.f32.mrf.mxu2 }
 0x100   : > { %v2227_v43 = vpack.c.bf16 %v1500_v39, %v1499_v38  ;;  %v1171_v47 = vadd.f32 %v2822_v26, %v1001_v24  ;;  %v1935_v38 = vor.u32 %v2162_v31, %v1932_v33  ;;  %v1922_v39 = vld [vmem:[%s2641_s19 + $0xf0] sm:$0xf]  ;;  %v2193_v24 = vld [vmem:[%s2641_s19 + $0x1f4] sm:$0xf0] }
 0x101   : > { %v924_v6 = vpop.f32.mrf.mxu0 }
 0x102   : > { %2106 = vmatmul.msk.bf16.gmra.mxu1 %vm786_vm2, %v1919_v29  ;;  %2367 = vst [vmem:[%s2785_s11 + $0x20] sm:$0xff] %v2227_v43   ;;  %2123 = vmatmul.msk.bf16.gmra.mxu3 %vm786_vm2, %v2055_v42  ;;  %v1468_v49 = vadd.f32 %v2763_v10, %v1171_v47  ;;  %v1094_v53 = vadd.f32 %v1093_v55, %v924_v6  ;;  %v1914_v55 = vld [vmem:[%s2641_s19 + $0xe0] sm:$0xf]  ;;  %v2050_v43 = vld [vmem:[%s2641_s19 + $0x1f0] sm:$0xf] }
 0x103   : > { %v1915_v14 = vor.u32 %v2159_v4, %v1914_v55 }
 0x104   : > { %963 = vmatmul.bf16.gmra.mxu0 %v1907_v45  ;;  %v1532_v51 = vmax.f32 %v1468_v49, 0.0  ;;  %1043 = vmatmul.bf16.gmra.mxu2 %v2035_v48  ;;  %v1437_v56 = vadd.f32 %v2763_v10, %v1094_v53  ;;  %v2051_v49 = vor.u32 %v2193_v24, %v2050_v43 }
 0x105   : > { %v2876_v54 = vpop.f32.mrf.mxu3 }
 0x106   : > { %v2307_v57 = vpack.c.bf16 %v1532_v51, %v1531_v50  ;;  %v1501_v5 = vmax.f32 %v1437_v56, 0.0 }
 0x107   : > { %v1100_v26 = vpop.f32.mrf.mxu1  ;;  %v1004_v58 = vpop.f32.mrf.mxu2 }
 0x108   : > { %2383 = vst [vmem:[%s2785_s11 + $0xa0] sm:$0xff] %v2307_v57   ;;  %v1174_v2 = vadd.f32 %v2832_v44, %v1004_v58 }
 0x109   : > { %v926_v59 = vpop.f32.mrf.mxu0 }
 0x10a   : > { %v1096_v60 = vadd.f32 %v1095_v18, %v926_v59  ;;  %v1469_v16 = vadd.f32 %v2763_v10, %v1174_v2  ;;  %v2043_v18 = vor.u32 %v2191_v11, %v2042_v9 }
 0x10c   : > { %v1438_v1 = vadd.f32 %v2763_v10, %v1096_v60  ;;  %v1533_v20 = vmax.f32 %v1469_v16, 0.0 }
 0x10d   : > { %v2888_v15 = vpop.f32.mrf.mxu3 }
 0x10e   : > { %v1502_v0 = vmax.f32 %v1438_v1, 0.0 }
 0x10f   : > { %v1103_v7 = vpop.f32.mrf.mxu1  ;;  %v1006_v13 = vpop.f32.mrf.mxu2 }
 0x110   : > { %v2232_v36 = vpack.c.bf16 %v1502_v0, %v1501_v5  ;;  %v1176_v52 = vadd.f32 %v2844_v62, %v1006_v13 }
 0x111   : > { %v929_v44 = vpop.f32.mrf.mxu0 }
 0x112   : > { %2107 = vmatmul.msk.bf16.gmra.mxu1 %vm786_vm2, %v1927_v3  ;;  %2368 = vst [vmem:[%s2785_s11 + $0x28] sm:$0xff] %v2232_v36   ;;  %v1470_v19 = vadd.f32 %v2763_v10, %v1176_v52  ;;  %v1099_v22 = vadd.f32 %v1098_v8, %v929_v44  ;;  %v2161_v8 = vld [vmem:[%s2641_s19 + $0xf4] sm:$0xf0] }
 0x113   : > { %v1923_v47 = vor.u32 %v2161_v8, %v1922_v39 }
 0x114   : > { %968 = vmatmul.bf16.gmra.mxu0 %v1915_v14  ;;  %v1534_v21 = vmax.f32 %v1470_v19, 0.0  ;;  %1048 = vmatmul.bf16.gmra.mxu2 %v2043_v18  ;;  %v1439_v28 = vadd.f32 %v2763_v10, %v1099_v22 }
 0x115   : > { %v1188_v29 = vpop.f32.mrf.mxu3 }
 0x116   : > { %v2312_v25 = vpack.c.bf16 %v1534_v21, %v1533_v20  ;;  %v1503_v40 = vmax.f32 %v1439_v28, 0.0 }
 0x117   : > { %v1105_v23 = vpop.f32.mrf.mxu1  ;;  %v1009_v27 = vpop.f32.mrf.mxu2 }
 0x118   : > { %2384 = vst [vmem:[%s2785_s11 + $0xa8] sm:$0xff] %v2312_v25   ;;  %v1179_v35 = vadd.f32 %v2854_v17, %v1009_v27 }
 0x119   : > { %v931_v62 = vpop.f32.mrf.mxu0 }
 0x11a   : > { %v1101_v30 = vadd.f32 %v1100_v26, %v931_v62  ;;  %v1471_v6 = vadd.f32 %v2763_v10, %v1179_v35 }
 0x11c   : > { %v1440_v34 = vadd.f32 %v2763_v10, %v1101_v30  ;;  %v1535_v53 = vmax.f32 %v1471_v6, 0.0 }
 0x11d   : > { %v1190_v51 = vpop.f32.mrf.mxu3 }
 0x11e   : > { %v1504_v41 = vmax.f32 %v1440_v34, 0.0 }
 0x11f   : > { %v1108_v42 = vpop.f32.mrf.mxu1  ;;  %v1011_v46 = vpop.f32.mrf.mxu2 }
 0x120   : > { %v2237_v45 = vpack.c.bf16 %v1504_v41, %v1503_v40  ;;  %v1181_v48 = vadd.f32 %v2866_v37, %v1011_v46 }
 0x121   : > { %v934_v17 = vpop.f32.mrf.mxu0 }
 0x122   : > { %2108 = vmatmul.msk.bf16.gmra.mxu1 %vm786_vm2, %v1935_v38  ;;  %2369 = vst [vmem:[%s2785_s11 + $0x30] sm:$0xff] %v2237_v45   ;;  %v1472_v50 = vadd.f32 %v2763_v10, %v1181_v48  ;;  %v1104_v57 = vadd.f32 %v1103_v7, %v934_v17 }
 0x124   : > { %973 = vmatmul.bf16.gmra.mxu0 %v1923_v47  ;;  %v1536_v26 = vmax.f32 %v1472_v50, 0.0  ;;  %1053 = vmatmul.bf16.gmra.mxu2 %v2051_v49  ;;  %v1441_v37 = vadd.f32 %v2763_v10, %v1104_v57 }
 0x125   : > { %v1193_v4 = vpop.f32.mrf.mxu3 }
 0x126   : > { %v2317_v59 = vpack.c.bf16 %v1536_v26, %v1535_v53  ;;  %v1505_v2 = vmax.f32 %v1441_v37, 0.0 }
 0x127   : > { %v1110_v58 = vpop.f32.mrf.mxu1  ;;  %v1014_v56 = vpop.f32.mrf.mxu2 }
 0x128   : > { %2385 = vst [vmem:[%s2785_s11 + $0xb0] sm:$0xff] %v2317_v59   ;;  %v1184_v1 = vadd.f32 %v2876_v54, %v1014_v56 }
 0x129   : > { %v936_v60 = vpop.f32.mrf.mxu0 }
 0x12a   : > { %v1106_v61 = vadd.f32 %v1105_v23, %v936_v60  ;;  %v1473_v7 = vadd.f32 %v2763_v10, %v1184_v1 }
 0x12c   : > { %v1442_v63 = vadd.f32 %v2763_v10, %v1106_v61  ;;  %v1537_v13 = vmax.f32 %v1473_v7, 0.0 }
 0x12d   : > { %v1195_v18 = vpop.f32.mrf.mxu3 }
 0x12e   : > { %v1506_v3 = vmax.f32 %v1442_v63, 0.0 }
 0x12f   : > { %v1113_v55 = vpop.f32.mrf.mxu1  ;;  %v1016_v0 = vpop.f32.mrf.mxu2 }
 0x130   : > { %v2242_v5 = vpack.c.bf16 %v1506_v3, %v1505_v2  ;;  %v1186_v9 = vadd.f32 %v2888_v15, %v1016_v0 }
 0x131   : > { %v939_v11 = vpop.f32.mrf.mxu0 }
 0x132   : > { %2370 = vst [vmem:[%s2785_s11 + $0x38] sm:$0xff] %v2242_v5   ;;  %v1474_v36 = vadd.f32 %v2763_v10, %v1186_v9  ;;  %v1109_v16 = vadd.f32 %v1108_v42, %v939_v11 }
 0x134   : > { %v1538_v14 = vmax.f32 %v1474_v36, 0.0  ;;  %v1443_v20 = vadd.f32 %v2763_v10, %v1109_v16 }
 0x135   : > { %v1198_v34 = vpop.f32.mrf.mxu3 }
 0x136   : > { %v2322_v54 = vpack.c.bf16 %v1538_v14, %v1537_v13  ;;  %v1507_v23 = vmax.f32 %v1443_v20, 0.0 }
 0x137   : > { %v1115_v52 = vpop.f32.mrf.mxu1  ;;  %v1019_v44 = vpop.f32.mrf.mxu2 }
 0x138   : > { %2386 = vst [vmem:[%s2785_s11 + $0xb8] sm:$0xff] %v2322_v54   ;;  %v1189_v15 = vadd.f32 %v1188_v29, %v1019_v44 }
 0x139   : > { %v941_v19 = vpop.f32.mrf.mxu0 }
 0x13a   : > { %v1111_v21 = vadd.f32 %v1110_v58, %v941_v19  ;;  %v1475_v30 = vadd.f32 %v2763_v10, %v1189_v15 }
 0x13c   : > { %v1444_v22 = vadd.f32 %v2763_v10, %v1111_v21  ;;  %v1539_v38 = vmax.f32 %v1475_v30, 0.0 }
 0x13d   : > { %v1200_v46 = vpop.f32.mrf.mxu3 }
 0x13e   : > { %v1508_v25 = vmax.f32 %v1444_v22, 0.0 }
 0x13f   : > { %v1118_v27 = vpop.f32.mrf.mxu1  ;;  %v1021_v28 = vpop.f32.mrf.mxu2 }
 0x140   : > { %v2247_v62 = vpack.c.bf16 %v1508_v25, %v1507_v23  ;;  %v1191_v31 = vadd.f32 %v1190_v51, %v1021_v28 }
 0x141   : > { %v944_v33 = vpop.f32.mrf.mxu0 }
 0x142   : > { %2371 = vst [vmem:[%s2785_s11 + $0x40] sm:$0xff] %v2247_v62   ;;  %v1476_v35 = vadd.f32 %v2763_v10, %v1191_v31  ;;  %v1114_v8 = vadd.f32 %v1113_v55, %v944_v33 }
 0x144   : > { %v1540_v39 = vmax.f32 %v1476_v35, 0.0  ;;  %v1445_v43 = vadd.f32 %v2763_v10, %v1114_v8 }
 0x145   : > { %v1203_v37 = vpop.f32.mrf.mxu3 }
 0x146   : > { %v2327_v41 = vpack.c.bf16 %v1540_v39, %v1539_v38  ;;  %v1509_v6 = vmax.f32 %v1445_v43, 0.0 }
 0x147   : > { %v1120_v40 = vpop.f32.mrf.mxu1  ;;  %v1024_v29 = vpop.f32.mrf.mxu2 }
 0x148   : > { %2387 = vst [vmem:[%s2785_s11 + $0xc0] sm:$0xff] %v2327_v41   ;;  %v1194_v47 = vadd.f32 %v1193_v4, %v1024_v29 }
 0x149   : > { %v946_v42 = vpop.f32.mrf.mxu0 }
 0x14a   : > { %v1116_v24 = vadd.f32 %v1115_v52, %v946_v42  ;;  %v1477_v51 = vadd.f32 %v2763_v10, %v1194_v47 }
 0x14c   : > { %v1446_v45 = vadd.f32 %v2763_v10, %v1116_v24  ;;  %v1541_v58 = vmax.f32 %v1477_v51, 0.0 }
 0x14d   : > { %v1205_v36 = vpop.f32.mrf.mxu3 }
 0x14e   : > { %v1510_v48 = vmax.f32 %v1446_v45, 0.0 }
 0x14f   : > { %v1123_v17 = vpop.f32.mrf.mxu1  ;;  %v1026_v50 = vpop.f32.mrf.mxu2 }
 0x150   : > { %v2252_v49 = vpack.c.bf16 %v1510_v48, %v1509_v6  ;;  %v1196_v53 = vadd.f32 %v1195_v18, %v1026_v50 }
 0x151   : > { %v949_v26 = vpop.f32.mrf.mxu0 }
 0x152   : > { %2372 = vst [vmem:[%s2785_s11 + $0x48] sm:$0xff] %v2252_v49   ;;  %v1478_v57 = vadd.f32 %v2763_v10, %v1196_v53  ;;  %v1119_v56 = vadd.f32 %v1118_v27, %v949_v26 }
 0x154   : > { %v1542_v59 = vmax.f32 %v1478_v57, 0.0  ;;  %v1447_v2 = vadd.f32 %v2763_v10, %v1119_v56 }
 0x155   : > { %v1208_v25 = vpop.f32.mrf.mxu3 }
 0x156   : > { %v2332_v61 = vpack.c.bf16 %v1542_v59, %v1541_v58  ;;  %v1511_v5 = vmax.f32 %v1447_v2, 0.0 }
 0x157   : > { %v1125_v60 = vpop.f32.mrf.mxu1  ;;  %v1029_v63 = vpop.f32.mrf.mxu2 }
 0x158   : > { %2388 = vst [vmem:[%s2785_s11 + $0xc8] sm:$0xff] %v2332_v61   ;;  %v1199_v4 = vadd.f32 %v1198_v34, %v1029_v63 }
 0x159   : > { %v951_v1 = vpop.f32.mrf.mxu0 }
 0x15a   : > { %v1121_v3 = vadd.f32 %v1120_v40, %v951_v1  ;;  %v1479_v13 = vadd.f32 %v2763_v10, %v1199_v4 }
 0x15c   : > { %v1448_v55 = vadd.f32 %v2763_v10, %v1121_v3  ;;  %v1543_v54 = vmax.f32 %v1479_v13, 0.0 }
 0x15d   : > { %v1210_v40 = vpop.f32.mrf.mxu3 }
 0x15e   : > { %v1512_v0 = vmax.f32 %v1448_v55, 0.0 }
 0x15f   : > { %v1128_v7 = vpop.f32.mrf.mxu1  ;;  %v1031_v11 = vpop.f32.mrf.mxu2 }
 0x160   : > { %v2257_v9 = vpack.c.bf16 %v1512_v0, %v1511_v5  ;;  %v1201_v14 = vadd.f32 %v1200_v46, %v1031_v11 }
 0x161   : > { %v954_v16 = vpop.f32.mrf.mxu0 }
 0x162   : > { %2373 = vst [vmem:[%s2785_s11 + $0x50] sm:$0xff] %v2257_v9   ;;  %v1480_v52 = vadd.f32 %v2763_v10, %v1201_v14  ;;  %v1124_v18 = vadd.f32 %v1123_v17, %v954_v16 }
 0x164   : > { %v1544_v44 = vmax.f32 %v1480_v52, 0.0  ;;  %v1449_v15 = vadd.f32 %v2763_v10, %v1124_v18 }
 0x165   : > { %v1213_v53 = vpop.f32.mrf.mxu3 }
 0x166   : > { %v2337_v20 = vpack.c.bf16 %v1544_v44, %v1543_v54  ;;  %v1513_v28 = vmax.f32 %v1449_v15, 0.0 }
 0x167   : > { %v1130_v19 = vpop.f32.mrf.mxu1  ;;  %v1034_v21 = vpop.f32.mrf.mxu2 }
 0x168   : > { %2389 = vst [vmem:[%s2785_s11 + $0xd0] sm:$0xff] %v2337_v20   ;;  %v1204_v62 = vadd.f32 %v1203_v37, %v1034_v21 }
 0x169   : > { %v956_v22 = vpop.f32.mrf.mxu0 }
 0x16a   : > { %v1126_v23 = vadd.f32 %v1125_v60, %v956_v22  ;;  %v1481_v35 = vadd.f32 %v2763_v10, %v1204_v62 }
 0x16c   : > { %v1450_v27 = vadd.f32 %v2763_v10, %v1126_v23  ;;  %v1545_v41 = vmax.f32 %v1481_v35, 0.0 }
 0x16d   : > { %v1215_v55 = vpop.f32.mrf.mxu3 }
 0x16e   : > { %v1514_v30 = vmax.f32 %v1450_v27, 0.0 }
 0x16f   : > { %v1133_v31 = vpop.f32.mrf.mxu1  ;;  %v1036_v34 = vpop.f32.mrf.mxu2 }
 0x170   : > { %v2262_v33 = vpack.c.bf16 %v1514_v30, %v1513_v28  ;;  %v1206_v38 = vadd.f32 %v1205_v36, %v1036_v34 }
 0x171   : > { %v959_v39 = vpop.f32.mrf.mxu0 }
 0x172   : > { %2374 = vst [vmem:[%s2785_s11 + $0x58] sm:$0xff] %v2262_v33   ;;  %v1482_v8 = vadd.f32 %v2763_v10, %v1206_v38  ;;  %v1129_v42 = vadd.f32 %v1128_v7, %v959_v39 }
 0x174   : > { %v1546_v29 = vmax.f32 %v1482_v8, 0.0  ;;  %v1451_v47 = vadd.f32 %v2763_v10, %v1129_v42 }
 0x175   : > { %v1218_v18 = vpop.f32.mrf.mxu3 }
 0x176   : > { %v2342_v24 = vpack.c.bf16 %v1546_v29, %v1545_v41  ;;  %v1515_v49 = vmax.f32 %v1451_v47, 0.0 }
 0x177   : > { %v1135_v43 = vpop.f32.mrf.mxu1  ;;  %v1039_v45 = vpop.f32.mrf.mxu2 }
 0x178   : > { %2390 = vst [vmem:[%s2785_s11 + $0xd8] sm:$0xff] %v2342_v24   ;;  %v1209_v17 = vadd.f32 %v1208_v25, %v1039_v45 }
 0x179   : > { %v961_v46 = vpop.f32.mrf.mxu0 }
 0x17a   : > { %v1131_v6 = vadd.f32 %v1130_v19, %v961_v46  ;;  %v1483_v58 = vadd.f32 %v2763_v10, %v1209_v17 }
 0x17c   : > { %v1452_v48 = vadd.f32 %v2763_v10, %v1131_v6  ;;  %v1547_v37 = vmax.f32 %v1483_v58, 0.0 }
 0x17d   : > { %v1220_v30 = vpop.f32.mrf.mxu3 }
 0x17e   : > { %v1516_v50 = vmax.f32 %v1452_v48, 0.0 }
 0x17f   : > { %v1138_v51 = vpop.f32.mrf.mxu1  ;;  %v1041_v57 = vpop.f32.mrf.mxu2 }
 0x180   : > { %v2267_v26 = vpack.c.bf16 %v1516_v50, %v1515_v49  ;;  %v1211_v59 = vadd.f32 %v1210_v40, %v1041_v57 }
 0x181   : > { %v964_v56 = vpop.f32.mrf.mxu0 }
 0x182   : > { %2375 = vst [vmem:[%s2785_s11 + $0x60] sm:$0xff] %v2267_v26   ;;  %v1484_v60 = vadd.f32 %v2763_v10, %v1211_v59  ;;  %v1134_v63 = vadd.f32 %v1133_v31, %v964_v56 }
 0x184   : > { %v1548_v61 = vmax.f32 %v1484_v60, 0.0  ;;  %v1453_v5 = vadd.f32 %v2763_v10, %v1134_v63 }
 0x185   : > { %v1223_v46 = vpop.f32.mrf.mxu3 }
 0x186   : > { %v2347_v2 = vpack.c.bf16 %v1548_v61, %v1547_v37  ;;  %v1517_v11 = vmax.f32 %v1453_v5, 0.0 }
 0x187   : > { %v1140_v1 = vpop.f32.mrf.mxu1  ;;  %v1044_v3 = vpop.f32.mrf.mxu2 }
 0x188   : > { %2391 = vst [vmem:[%s2785_s11 + $0xe0] sm:$0xff] %v2347_v2   ;;  %v1214_v9 = vadd.f32 %v1213_v53, %v1044_v3 }
 0x189   : > { %v966_v4 = vpop.f32.mrf.mxu0 }
 0x18a   : > { %v1136_v0 = vadd.f32 %v1135_v43, %v966_v4  ;;  %v1485_v52 = vadd.f32 %v2763_v10, %v1214_v9 }
 0x18c   : > { %v1454_v7 = vadd.f32 %v2763_v10, %v1136_v0  ;;  %v1549_v20 = vmax.f32 %v1485_v52, 0.0 }
 0x18e   : > { %v1518_v36 = vmax.f32 %v1454_v7, 0.0 }
 0x18f   : > { %v1143_v13 = vpop.f32.mrf.mxu1  ;;  %v1046_v16 = vpop.f32.mrf.mxu2 }
 0x190   : > { %v2272_v14 = vpack.c.bf16 %v1518_v36, %v1517_v11  ;;  %v1216_v54 = vadd.f32 %v1215_v55, %v1046_v16 }
 0x191   : > { %v969_v44 = vpop.f32.mrf.mxu0 }
 0x192   : > { %2376 = vst [vmem:[%s2785_s11 + $0x68] sm:$0xff] %v2272_v14   ;;  %v1486_v19 = vadd.f32 %v2763_v10, %v1216_v54  ;;  %v1139_v22 = vadd.f32 %v1138_v51, %v969_v44 }
 0x194   : > { %v1550_v21 = vmax.f32 %v1486_v19, 0.0  ;;  %v1455_v62 = vadd.f32 %v2763_v10, %v1139_v22 }
 0x196   : > { %v2352_v23 = vpack.c.bf16 %v1550_v21, %v1549_v20  ;;  %v1519_v34 = vmax.f32 %v1455_v62, 0.0 }
 0x197   : > { %v1145_v15 = vpop.f32.mrf.mxu1  ;;  %v1049_v25 = vpop.f32.mrf.mxu2 }
 0x198   : > { %2392 = vst [vmem:[%s2785_s11 + $0xe8] sm:$0xff] %v2352_v23   ;;  %v1219_v33 = vadd.f32 %v1218_v18, %v1049_v25 }
 0x199   : > { %v971_v27 = vpop.f32.mrf.mxu0 }
 0x19a   : > { %v1141_v28 = vadd.f32 %v1140_v1, %v971_v27  ;;  %v1487_v40 = vadd.f32 %v2763_v10, %v1219_v33 }
 0x19c   : > { %v1456_v31 = vadd.f32 %v2763_v10, %v1141_v28  ;;  %v1551_v24 = vmax.f32 %v1487_v40, 0.0 }
 0x19e   : > { %v1520_v35 = vmax.f32 %v1456_v31, 0.0 }
 0x19f   : > { %v1148_v38 = vpop.f32.mrf.mxu1  ;;  %v1051_v8 = vpop.f32.mrf.mxu2 }
 0x1a0   : > { %v2277_v39 = vpack.c.bf16 %v1520_v35, %v1519_v34  ;;  %v1221_v41 = vadd.f32 %v1220_v30, %v1051_v8  ;;  %v1149_v42 = vadd.f32 %v1148_v38, %v2765_v12 }
 0x1a1   : > { %v974_v29 = vpop.f32.mrf.mxu0 }
 0x1a2   : > { %2377 = vst [vmem:[%s2785_s11 + $0x70] sm:$0xff] %v2277_v39   ;;  %v1488_v43 = vadd.f32 %v2763_v10, %v1221_v41  ;;  %v1144_v47 = vadd.f32 %v1143_v13, %v974_v29  ;;  %v1459_v48 = vadd.f32 %v2763_v10, %v1149_v42 }
 0x1a4   : > { %v1552_v45 = vmax.f32 %v1488_v43, 0.0  ;;  %v1457_v12 = vadd.f32 %v2763_v10, %v1144_v47  ;;  %v1523_v57 = vmax.f32 %v1459_v48, 0.0 }
 0x1a6   : > { %v2357_v17 = vpack.c.bf16 %v1552_v45, %v1551_v24  ;;  %v1521_v37 = vmax.f32 %v1457_v12, 0.0 }
 0x1a7   : > { %v1150_v6 = vpop.f32.mrf.mxu1  ;;  %v1054_v50 = vpop.f32.mrf.mxu2 }
 0x1a8   : > { %v1151_v49 = vadd.f32 %v1150_v6, %v2782_v32  ;;  %2393 = vst [vmem:[%s2785_s11 + $0xf0] sm:$0xff] %v2357_v17   ;;  %v1224_v60 = vadd.f32 %v1223_v46, %v1054_v50  ;;  %v1225_v32 = vpop.f32.mrf.mxu3 }
 0x1a9   : > { %v976_v53 = vpop.f32.mrf.mxu0 }
 0x1aa   : > { %v1460_v51 = vadd.f32 %v2763_v10, %v1151_v49  ;;  %v1146_v26 = vadd.f32 %v1145_v15, %v976_v53  ;;  %v1489_v2 = vadd.f32 %v2763_v10, %v1224_v60 }
 0x1ac   : > { %v1524_v58 = vmax.f32 %v1460_v51, 0.0  ;;  %v1458_v59 = vadd.f32 %v2763_v10, %v1146_v26  ;;  %v1553_v4 = vmax.f32 %v1489_v2, 0.0 }
 0x1ae   : > { %v2287_v56 = vpack.c.bf16 %v1524_v58, %v1523_v57  ;;  %v1522_v61 = vmax.f32 %v1458_v59, 0.0 }
 0x1af   : > { %v1056_v1 = vpop.f32.mrf.mxu2 }
 0x1b0   : > { %2379 = vst [vmem:[%s2785_s11 + $0x80] sm:$0xff] %v2287_v56   ;;  %v2282_v63 = vpack.c.bf16 %v1522_v61, %v1521_v37  ;;  %v1226_v3 = vadd.f32 %v1225_v32, %v1056_v1 }
 0x1b2   : > { %2378 = vst [vmem:[%s2785_s11 + $0x78] sm:$0xff] %v2282_v63   ;;  %v1490_v55 = vadd.f32 %v2763_v10, %v1226_v3 }
 0x1b4   : > { %v1554_v5 = vmax.f32 %v1490_v55, 0.0 }
 0x1b6   : > { %v2362_v0 = vpack.c.bf16 %v1554_v5, %v1553_v4 }
 0x1b8   : > { %2394 = vst [vmem:[%s2785_s11 + $0xf8] sm:$0xff] %v2362_v0  }
 0x1b9   : > { %2491 = shalt.err (!%p2488_p5)
}
 0x1ba   : > { %s2545_s8 = smov 64   ;;  %s2546_s9 = smov 4  }
 0x1bb   : > { %2405 = dma.vmem_to_hbm [thread:$0]  (%p2607_p4), %s1697_s15, 4096, %s1699_s26, %s1684_s27, %s2545_s8, %s2545_s8, %s2546_s9  }
 0x1bc PF: > { %p2411_p6 = scmp.ge.s32.totalorder %s2542_s17, 2  ;;  %s1713_s10 = sand.u32 1, %s2522_s12  }
 0x1bd   : > { %s1714_s11 = scalar_lea.sflag [#allocation4], %s1713_s10 }
 0x1be   : > { %p2408_p7 = pnand %p2411_p6, %p2614_p8 }
 0x1c0   : > { %p2409_p9 = pneg %p2408_p7 }
 0x1c2   : > { %2517 = dma.done.wait (%p2409_p9), %s1714_s11, 4096  }
 0x1c3   : > { %2519 = vsyncadd (%p2409_p9), %s1714_s11, 4294963200  ;;  %s16_s17 = sadd.s32 1, %s2542_s17   ;;  %s3017_s12 = smov %s2526_s13 }
 0x1c4   : > { %p13_p10 = scmp.ge.s32.totalorder %s16_s17, 6   ;;  %s3018_s13 = smov %s2530_s14 }
 0x1c5   : > { %s3019_s14 = smov %s2620_s25  ;;  %s3020_s15 = smov %s2538_s16 }
 0x1c6   : > { %s3021_s16 = smov %s3023_s20  ;;  %15 = sbr.rel (!%p13_p10) target bundleno = 4 (0x4), region = 78 }
 0x1cb   :  { %1720 = vsyncpa [#allocation4], 1 }
 0x1cc   :  { %1722 = vsyncpa [#allocation4 + $0x1], 1 }

</bundles_post_ra>
